<compile_context>
chip_gen: v5e
topology: v5e:2x2
jax: 0.10.0
libtpu: 0.0.40
codegen_flags: <defaults>
</compile_context>

<pallas_src>
import math
from functools import partial

import jax
import jax.numpy as jnp
from jax.experimental import pallas as pl
from jax.experimental.pallas import tpu as pltpu

LANE = 128  # pad filter_num / class_num to one lane tile


# --------------------------------------------------------------------------
# Fused CNN-head kernel: conv (as one big matmul) -> ReLU -> max over time
# -> concat -> linear classifier.  Single grid step; everything stays in VMEM.
# --------------------------------------------------------------------------
def _make_head_kernel(B, T, filter_sizes, P):
    def kernel(x_ref, wc_ref, bc_ref, wl_ref, bl_ref, out_ref):
        # One MXU matmul covering every (filter_size, row-offset) weight slab:
        #   (B*T, E) @ (E, n_slab*P) -> (B*T, n_slab*P), f32 accumulate.
        y = jnp.dot(x_ref[...], wc_ref[...],
                    preferred_element_type=jnp.float32)

        feat_rows = []
        for b in range(B):                       # tiny static unroll
            yb = y[b * T:(b + 1) * T, :]         # (T, n_slab*P)
            per_k = []
            base = 0
            for ki, k in enumerate(filter_sizes):
                Tk = T - k + 1
                # valid convolution over time = sum of row-shifted slabs
                acc = yb[0:Tk, base * P:(base + 1) * P]
                for r in range(1, k):
                    acc = acc + yb[r:r + Tk,
                                   (base + r) * P:(base + r + 1) * P]
                acc = acc + bc_ref[ki:ki + 1, :]          # (Tk, P) + (1, P)
                acc = jnp.maximum(acc, 0.0)               # ReLU
                per_k.append(jnp.max(acc, axis=0, keepdims=True))  # max_pool1d
                base += k
            feat_rows.append(jnp.concatenate(per_k, axis=-1))      # (1, n_k*P)
        feat = jnp.concatenate(feat_rows, axis=0)                   # (B, n_k*P)

        # dropout = identity (eval mode); classifier on the MXU.
        logits = jnp.dot(feat.astype(wl_ref.dtype), wl_ref[...],
                         preferred_element_type=jnp.float32) + bl_ref[...]
        out_ref[...] = logits                                        # (B, P)

    return kernel


def bertcnn_forward(params, x, *, filter_sizes, class_num, pad=LANE):
    """x: (B, T, E) float32 BERT last_hidden_state.  Returns logits (B, C)."""
    B, T, E = x.shape
    n_k = len(filter_sizes)
    n_slab = sum(filter_sizes)

    x2d = x.reshape(B * T, E).astype(jnp.bfloat16)   # bf16 MXU operand

    kernel = _make_head_kernel(B, T, filter_sizes, pad)
    out = pl.pallas_call(
        kernel,
        out_shape=jax.ShapeDtypeStruct((B, pad), jnp.float32),
        grid=(1,),
        in_specs=[
            pl.BlockSpec((B * T, E), lambda i: (0, 0)),
            pl.BlockSpec((E, n_slab * pad), lambda i: (0, 0)),
            pl.BlockSpec((n_k, pad), lambda i: (0, 0)),
            pl.BlockSpec((n_k * pad, pad), lambda i: (0, 0)),
            pl.BlockSpec((1, pad), lambda i: (0, 0)),
        ],
        out_specs=pl.BlockSpec((B, pad), lambda i: (0, 0)),
        compiler_params=pltpu.CompilerParams(
            dimension_semantics=("arbitrary",)),
    )(x2d, params["w_conv"], params["b_conv"], params["w_cls"], params["b_cls"])

    return out[:, :class_num]   # lane-dense kernel output; slice real classes


# --------------------------------------------------------------------------
# Parameter init (PyTorch-default distributions) + one-time packing into
# pre-transposed, lane-padded, bf16 slabs for the kernel.
# --------------------------------------------------------------------------
def init_params(key, E, filter_sizes, filter_num, class_num, pad=LANE):
    n_k = len(filter_sizes)
    n_slab = sum(filter_sizes)
    keys = jax.random.split(key, 2 * n_k + 2)

    conv_ws, conv_bs = [], []
    for i, k in enumerate(filter_sizes):
        fan_in = 1 * k * E
        bound = 1.0 / math.sqrt(fan_in)
        conv_ws.append(jax.random.uniform(keys[2 * i], (filter_num, 1, k, E),
                                          jnp.float32, -bound, bound))
        conv_bs.append(jax.random.uniform(keys[2 * i + 1], (filter_num,),
                                          jnp.float32, -bound, bound))

    feat_in = filter_num * n_k
    bound = 1.0 / math.sqrt(feat_in)
    cls_w = jax.random.uniform(keys[-2], (class_num, feat_in),
                               jnp.float32, -bound, bound)
    cls_b = jax.random.uniform(keys[-1], (class_num,), jnp.float32,
                               -bound, bound)

    # ---- pack: conv weights -> (E, n_slab*pad), one slab per (k, row r) ----
    w_conv = jnp.zeros((E, n_slab * pad), jnp.float32)
    b_conv = jnp.zeros((n_k, pad), jnp.float32)
    base = 0
    for ki, k in enumerate(filter_sizes):
        for r in range(k):
            slab = conv_ws[ki][:, 0, r, :].T                    # (E, filter_num)
            col = (base + r) * pad
            w_conv = w_conv.at[:, col:col + filter_num].set(slab)
        b_conv = b_conv.at[ki, :filter_num].set(conv_bs[ki])
        base += k

    # ---- pack: classifier -> (n_k*pad, pad), zero rows for padded channels ----
    w_cls = jnp.zeros((n_k * pad, pad), jnp.float32)
    for ki in range(n_k):
        blk = cls_w[:, ki * filter_num:(ki + 1) * filter_num].T  # (filter_num, C)
        w_cls = w_cls.at[ki * pad:ki * pad + filter_num, :class_num].set(blk)
    b_cls = jnp.zeros((1, pad), jnp.float32).at[0, :class_num].set(cls_b)

    packed = dict(w_conv=w_conv.astype(jnp.bfloat16),
                  b_conv=b_conv,
                  w_cls=w_cls.astype(jnp.bfloat16),
                  b_cls=b_cls)
    raw = dict(conv_ws=conv_ws, conv_bs=conv_bs, cls_w=cls_w, cls_b=cls_b)
    return packed, raw


# --------------------------------------------------------------------------
# Plain-JAX reference of the PyTorch head (from last_hidden_state onward)
# --------------------------------------------------------------------------
def reference_head(x, raw, filter_sizes):
    B, T, E = x.shape
    feats = []
    for ki, k in enumerate(filter_sizes):
        w = raw["conv_ws"][ki][:, 0]                 # (F, k, E)
        b = raw["conv_bs"][ki]
        Tk = T - k + 1
        windows = jnp.stack([x[:, t:t + k, :] for t in range(Tk)], axis=1)
        out = jnp.einsum('btke,fke->bft', windows, w) + b[None, :, None]
        out = jnp.maximum(out, 0.0)                  # ReLU
        feats.append(jnp.max(out, axis=2))           # max_pool1d over time
    feat = jnp.concatenate(feats, axis=1)
    return feat @ raw["cls_w"].T + raw["cls_b"]      # dropout = identity


if __name__ == "__main__":
    B, T, E = 2, 8, 32          # batch, seq len, bert hidden size (small)
    FILTER_SIZES = (2, 3, 4)
    FILTER_NUM = 4
    C = 4                       # class_num

    key = jax.random.PRNGKey(0)
    k_param, k_x = jax.random.split(key)
    params, raw = init_params(k_param, E, FILTER_SIZES, FILTER_NUM, C)

    # Stand-in for BERT last_hidden_state (see TODO at top of file).
    x = jax.random.normal(k_x, (B, T, E), jnp.float32)

    fwd = jax.jit(partial(bertcnn_forward,
                          filter_sizes=FILTER_SIZES, class_num=C))
    logits = jax.block_until_ready(fwd(params, x))

    assert logits.shape == (B, C)
    assert bool(jnp.all(jnp.isfinite(logits)))
    ref = reference_head(x, raw, FILTER_SIZES)
    assert bool(jnp.allclose(logits, ref, atol=3e-2, rtol=3e-2))
    print("KERNEL_OK")
</pallas_src>

<mosaic_0001>
module attributes {stable_mosaic.version = 11 : i64} {
  func.func @kernel(%arg0: i32, %arg1: memref<16x32xbf16, #tpu.memory_space<vmem>>, %arg2: memref<32x1152xbf16, #tpu.memory_space<vmem>>, %arg3: memref<3x128xf32, #tpu.memory_space<vmem>>, %arg4: memref<384x128xbf16, #tpu.memory_space<vmem>>, %arg5: memref<1x128xf32, #tpu.memory_space<vmem>>, %arg6: memref<2x128xf32, #tpu.memory_space<vmem>>) attributes {dimension_semantics = [#tpu.dimension_semantics<arbitrary>], iteration_bounds = array<i64: 1>, scalar_prefetch = 0 : i64, scratch_operands = 0 : i64, tpu.core_type = #tpu.core_type<tc>, window_params = [{pipeline_mode = #tpu.pipeline_mode<synchronous>, transform_indices = @transform_0, window_bounds = array<i64: 16, 32>}, {pipeline_mode = #tpu.pipeline_mode<synchronous>, transform_indices = @transform_1, window_bounds = array<i64: 32, 1152>}, {pipeline_mode = #tpu.pipeline_mode<synchronous>, transform_indices = @transform_2, window_bounds = array<i64: 3, 128>}, {pipeline_mode = #tpu.pipeline_mode<synchronous>, transform_indices = @transform_3, window_bounds = array<i64: 384, 128>}, {pipeline_mode = #tpu.pipeline_mode<synchronous>, transform_indices = @transform_4, window_bounds = array<i64: 1, 128>}, {pipeline_mode = #tpu.pipeline_mode<synchronous>, transform_indices = @transform_5, window_bounds = array<i64: 2, 128>}]} {
    %c0 = arith.constant 0 : index
    %c0_0 = arith.constant 0 : index
    %0 = vector.load %arg1[%c0, %c0_0] : memref<16x32xbf16, #tpu.memory_space<vmem>>, vector<16x32xbf16>
    %c0_1 = arith.constant 0 : index
    %c0_2 = arith.constant 0 : index
    %1 = vector.load %arg2[%c0_1, %c0_2] : memref<32x1152xbf16, #tpu.memory_space<vmem>>, vector<32x1152xbf16>
    %cst = arith.constant dense<0.000000e+00> : vector<16x1152xf32>
    %2 = tpu.matmul %0, %1, %cst {dimension_numbers = #tpu.dot_dimension_numbers<[1], [0], [0], [1], [0, 0, 1, 1], [], []>} : vector<16x32xbf16>, vector<32x1152xbf16>, vector<16x1152xf32> -> vector<16x1152xf32>
    %3 = vector.extract_strided_slice %2 {offsets = [0, 0], sizes = [8, 1152], strides = [1, 1]} : vector<16x1152xf32> to vector<8x1152xf32>
    %4 = vector.extract_strided_slice %3 {offsets = [0, 0], sizes = [7, 128], strides = [1, 1]} : vector<8x1152xf32> to vector<7x128xf32>
    %5 = vector.extract_strided_slice %3 {offsets = [1, 128], sizes = [7, 128], strides = [1, 1]} : vector<8x1152xf32> to vector<7x128xf32>
    %6 = arith.addf %4, %5 : vector<7x128xf32>
    %c0_3 = arith.constant 0 : index
    %c0_4 = arith.constant 0 : index
    %7 = vector.load %arg3[%c0_3, %c0_4] : memref<3x128xf32, #tpu.memory_space<vmem>>, vector<1x128xf32>
    %8 = vector.broadcast %7 : vector<1x128xf32> to vector<7x128xf32>
    %9 = arith.addf %6, %8 : vector<7x128xf32>
    %cst_5 = arith.constant 0.000000e+00 : f32
    %10 = vector.broadcast %cst_5 : f32 to vector<7x128xf32>
    %11 = arith.maximumf %9, %10 : vector<7x128xf32>
    %cst_6 = arith.constant dense<0xFF800000> : vector<128xf32>
    %12 = vector.multi_reduction <maximumf>, %11, %cst_6 [0] : vector<7x128xf32> to vector<128xf32>
    %13 = vector.shape_cast %12 : vector<128xf32> to vector<1x128xf32>
    %14 = vector.extract_strided_slice %3 {offsets = [0, 256], sizes = [6, 128], strides = [1, 1]} : vector<8x1152xf32> to vector<6x128xf32>
    %15 = vector.extract_strided_slice %3 {offsets = [1, 384], sizes = [6, 128], strides = [1, 1]} : vector<8x1152xf32> to vector<6x128xf32>
    %16 = arith.addf %14, %15 : vector<6x128xf32>
    %17 = vector.extract_strided_slice %3 {offsets = [2, 512], sizes = [6, 128], strides = [1, 1]} : vector<8x1152xf32> to vector<6x128xf32>
    %18 = arith.addf %16, %17 : vector<6x128xf32>
    %c1 = arith.constant 1 : index
    %c0_7 = arith.constant 0 : index
    %19 = vector.load %arg3[%c1, %c0_7] : memref<3x128xf32, #tpu.memory_space<vmem>>, vector<1x128xf32>
    %20 = vector.broadcast %19 : vector<1x128xf32> to vector<6x128xf32>
    %21 = arith.addf %18, %20 : vector<6x128xf32>
    %cst_8 = arith.constant 0.000000e+00 : f32
    %22 = vector.broadcast %cst_8 : f32 to vector<6x128xf32>
    %23 = arith.maximumf %21, %22 : vector<6x128xf32>
    %cst_9 = arith.constant dense<0xFF800000> : vector<128xf32>
    %24 = vector.multi_reduction <maximumf>, %23, %cst_9 [0] : vector<6x128xf32> to vector<128xf32>
    %25 = vector.shape_cast %24 : vector<128xf32> to vector<1x128xf32>
    %26 = vector.extract_strided_slice %3 {offsets = [0, 640], sizes = [5, 128], strides = [1, 1]} : vector<8x1152xf32> to vector<5x128xf32>
    %27 = vector.extract_strided_slice %3 {offsets = [1, 768], sizes = [5, 128], strides = [1, 1]} : vector<8x1152xf32> to vector<5x128xf32>
    %28 = arith.addf %26, %27 : vector<5x128xf32>
    %29 = vector.extract_strided_slice %3 {offsets = [2, 896], sizes = [5, 128], strides = [1, 1]} : vector<8x1152xf32> to vector<5x128xf32>
    %30 = arith.addf %28, %29 : vector<5x128xf32>
    %31 = vector.extract_strided_slice %3 {offsets = [3, 1024], sizes = [5, 128], strides = [1, 1]} : vector<8x1152xf32> to vector<5x128xf32>
    %32 = arith.addf %30, %31 : vector<5x128xf32>
    %c2 = arith.constant 2 : index
    %c0_10 = arith.constant 0 : index
    %33 = vector.load %arg3[%c2, %c0_10] : memref<3x128xf32, #tpu.memory_space<vmem>>, vector<1x128xf32>
    %34 = vector.broadcast %33 : vector<1x128xf32> to vector<5x128xf32>
    %35 = arith.addf %32, %34 : vector<5x128xf32>
    %cst_11 = arith.constant 0.000000e+00 : f32
    %36 = vector.broadcast %cst_11 : f32 to vector<5x128xf32>
    %37 = arith.maximumf %35, %36 : vector<5x128xf32>
    %cst_12 = arith.constant dense<0xFF800000> : vector<128xf32>
    %38 = vector.multi_reduction <maximumf>, %37, %cst_12 [0] : vector<5x128xf32> to vector<128xf32>
    %39 = vector.shape_cast %38 : vector<128xf32> to vector<1x128xf32>
    %40 = tpu.concatenate %13, %25, %39 in 1 : vector<1x128xf32>, vector<1x128xf32>, vector<1x128xf32> -> vector<1x384xf32>
    %41 = vector.extract_strided_slice %2 {offsets = [8, 0], sizes = [8, 1152], strides = [1, 1]} : vector<16x1152xf32> to vector<8x1152xf32>
    %42 = vector.extract_strided_slice %41 {offsets = [0, 0], sizes = [7, 128], strides = [1, 1]} : vector<8x1152xf32> to vector<7x128xf32>
    %43 = vector.extract_strided_slice %41 {offsets = [1, 128], sizes = [7, 128], strides = [1, 1]} : vector<8x1152xf32> to vector<7x128xf32>
    %44 = arith.addf %42, %43 : vector<7x128xf32>
    %c0_13 = arith.constant 0 : index
    %c0_14 = arith.constant 0 : index
    %45 = vector.load %arg3[%c0_13, %c0_14] : memref<3x128xf32, #tpu.memory_space<vmem>>, vector<1x128xf32>
    %46 = vector.broadcast %45 : vector<1x128xf32> to vector<7x128xf32>
    %47 = arith.addf %44, %46 : vector<7x128xf32>
    %cst_15 = arith.constant 0.000000e+00 : f32
    %48 = vector.broadcast %cst_15 : f32 to vector<7x128xf32>
    %49 = arith.maximumf %47, %48 : vector<7x128xf32>
    %cst_16 = arith.constant dense<0xFF800000> : vector<128xf32>
    %50 = vector.multi_reduction <maximumf>, %49, %cst_16 [0] : vector<7x128xf32> to vector<128xf32>
    %51 = vector.shape_cast %50 : vector<128xf32> to vector<1x128xf32>
    %52 = vector.extract_strided_slice %41 {offsets = [0, 256], sizes = [6, 128], strides = [1, 1]} : vector<8x1152xf32> to vector<6x128xf32>
    %53 = vector.extract_strided_slice %41 {offsets = [1, 384], sizes = [6, 128], strides = [1, 1]} : vector<8x1152xf32> to vector<6x128xf32>
    %54 = arith.addf %52, %53 : vector<6x128xf32>
    %55 = vector.extract_strided_slice %41 {offsets = [2, 512], sizes = [6, 128], strides = [1, 1]} : vector<8x1152xf32> to vector<6x128xf32>
    %56 = arith.addf %54, %55 : vector<6x128xf32>
    %c1_17 = arith.constant 1 : index
    %c0_18 = arith.constant 0 : index
    %57 = vector.load %arg3[%c1_17, %c0_18] : memref<3x128xf32, #tpu.memory_space<vmem>>, vector<1x128xf32>
    %58 = vector.broadcast %57 : vector<1x128xf32> to vector<6x128xf32>
    %59 = arith.addf %56, %58 : vector<6x128xf32>
    %cst_19 = arith.constant 0.000000e+00 : f32
    %60 = vector.broadcast %cst_19 : f32 to vector<6x128xf32>
    %61 = arith.maximumf %59, %60 : vector<6x128xf32>
    %cst_20 = arith.constant dense<0xFF800000> : vector<128xf32>
    %62 = vector.multi_reduction <maximumf>, %61, %cst_20 [0] : vector<6x128xf32> to vector<128xf32>
    %63 = vector.shape_cast %62 : vector<128xf32> to vector<1x128xf32>
    %64 = vector.extract_strided_slice %41 {offsets = [0, 640], sizes = [5, 128], strides = [1, 1]} : vector<8x1152xf32> to vector<5x128xf32>
    %65 = vector.extract_strided_slice %41 {offsets = [1, 768], sizes = [5, 128], strides = [1, 1]} : vector<8x1152xf32> to vector<5x128xf32>
    %66 = arith.addf %64, %65 : vector<5x128xf32>
    %67 = vector.extract_strided_slice %41 {offsets = [2, 896], sizes = [5, 128], strides = [1, 1]} : vector<8x1152xf32> to vector<5x128xf32>
    %68 = arith.addf %66, %67 : vector<5x128xf32>
    %69 = vector.extract_strided_slice %41 {offsets = [3, 1024], sizes = [5, 128], strides = [1, 1]} : vector<8x1152xf32> to vector<5x128xf32>
    %70 = arith.addf %68, %69 : vector<5x128xf32>
    %c2_21 = arith.constant 2 : index
    %c0_22 = arith.constant 0 : index
    %71 = vector.load %arg3[%c2_21, %c0_22] : memref<3x128xf32, #tpu.memory_space<vmem>>, vector<1x128xf32>
    %72 = vector.broadcast %71 : vector<1x128xf32> to vector<5x128xf32>
    %73 = arith.addf %70, %72 : vector<5x128xf32>
    %cst_23 = arith.constant 0.000000e+00 : f32
    %74 = vector.broadcast %cst_23 : f32 to vector<5x128xf32>
    %75 = arith.maximumf %73, %74 : vector<5x128xf32>
    %cst_24 = arith.constant dense<0xFF800000> : vector<128xf32>
    %76 = vector.multi_reduction <maximumf>, %75, %cst_24 [0] : vector<5x128xf32> to vector<128xf32>
    %77 = vector.shape_cast %76 : vector<128xf32> to vector<1x128xf32>
    %78 = tpu.concatenate %51, %63, %77 in 1 : vector<1x128xf32>, vector<1x128xf32>, vector<1x128xf32> -> vector<1x384xf32>
    %79 = tpu.concatenate %40, %78 in 0 : vector<1x384xf32>, vector<1x384xf32> -> vector<2x384xf32>
    %80 = arith.truncf %79 : vector<2x384xf32> to vector<2x384xbf16>
    %c0_25 = arith.constant 0 : index
    %c0_26 = arith.constant 0 : index
    %81 = vector.load %arg4[%c0_25, %c0_26] : memref<384x128xbf16, #tpu.memory_space<vmem>>, vector<384x128xbf16>
    %cst_27 = arith.constant dense<0.000000e+00> : vector<2x128xf32>
    %82 = tpu.matmul %80, %81, %cst_27 {dimension_numbers = #tpu.dot_dimension_numbers<[1], [0], [0], [1], [0, 0, 1, 1], [], []>} : vector<2x384xbf16>, vector<384x128xbf16>, vector<2x128xf32> -> vector<2x128xf32>
    %c0_28 = arith.constant 0 : index
    %c0_29 = arith.constant 0 : index
    %83 = vector.load %arg5[%c0_28, %c0_29] : memref<1x128xf32, #tpu.memory_space<vmem>>, vector<1x128xf32>
    %84 = vector.broadcast %83 : vector<1x128xf32> to vector<2x128xf32>
    %85 = arith.addf %82, %84 : vector<2x128xf32>
    %c0_30 = arith.constant 0 : index
    %c0_31 = arith.constant 0 : index
    %86 = vector.load %arg6[%c0_30, %c0_31] : memref<2x128xf32, #tpu.memory_space<vmem>>, vector<2x128xf32>
    tpu.vector_store %arg6[%c0_30, %c0_31], %85 {strides = array<i32>} : memref<2x128xf32, #tpu.memory_space<vmem>>, vector<2x128xf32>,
    return
  }
  func.func @transform_0(%arg0: i32) -> (i32, i32) {
    %c0_i32 = arith.constant 0 : i32
    %c0_i32_0 = arith.constant 0 : i32
    %c0_i32_1 = arith.constant 0 : i32
    return %c0_i32, %c0_i32_0 : i32, i32
  }
  func.func @transform_1(%arg0: i32) -> (i32, i32) {
    %c0_i32 = arith.constant 0 : i32
    %c0_i32_0 = arith.constant 0 : i32
    %c0_i32_1 = arith.constant 0 : i32
    return %c0_i32, %c0_i32_0 : i32, i32
  }
  func.func @transform_2(%arg0: i32) -> (i32, i32) {
    %c0_i32 = arith.constant 0 : i32
    %c0_i32_0 = arith.constant 0 : i32
    %c0_i32_1 = arith.constant 0 : i32
    return %c0_i32, %c0_i32_0 : i32, i32
  }
  func.func @transform_3(%arg0: i32) -> (i32, i32) {
    %c0_i32 = arith.constant 0 : i32
    %c0_i32_0 = arith.constant 0 : i32
    %c0_i32_1 = arith.constant 0 : i32
    return %c0_i32, %c0_i32_0 : i32, i32
  }
  func.func @transform_4(%arg0: i32) -> (i32, i32) {
    %c0_i32 = arith.constant 0 : i32
    %c0_i32_0 = arith.constant 0 : i32
    %c0_i32_1 = arith.constant 0 : i32
    return %c0_i32, %c0_i32_0 : i32, i32
  }
  func.func @transform_5(%arg0: i32) -> (i32, i32) {
    %c0_i32 = arith.constant 0 : i32
    %c0_i32_0 = arith.constant 0 : i32
    %c0_i32_1 = arith.constant 0 : i32
    return %c0_i32, %c0_i32_0 : i32, i32
  }
}

</mosaic_0001>

<bundles_post_ra>
// kernel: bertcnn_forward.1
= control target key start
LH: loop header
LB: loop body
LE: loop exit
PB: predicated region body
PF: predicated region fallthrough
CT: control target
= control target key end

     0   :  { %10 = vsyncpa [#allocation3], 0  ;;  %s1076_s0 = inlined_call_operand.vmem [shape: bf16[16,32], index: 0, kind: input, shape index: {}]   ;;  %s1077_s1 = inlined_call_operand.hbm [shape: bf16[32,1152], index: 1, kind: input, shape index: {}]   ;;  %s1078_s2 = inlined_call_operand.vmem [shape: f32[3,128], index: 2, kind: input, shape index: {}]   ;;  %s1079_s3 = inlined_call_operand.hbm [shape: bf16[384,128], index: 3, kind: input, shape index: {}]   ;;  %s1080_s4 = inlined_call_operand.vmem [shape: f32[1,128], index: 4, kind: input, shape index: {}]   ;;  %s1081_s5 = inlined_call_operand.hbm [shape: f32[2,128], index: 5, kind: output, shape index: {}]  }
   0x1   :  { %11 = vsyncpa [#allocation6], 0 }
   0x2   :  { %12 = vsyncpa [#allocation4], 0  ;;  %s19_s20 = sshll.u32 %s1077_s1, 4  ;;  %s997_s21 = smov [#allocation2]   ;;  %s20_s20 = int_to_ptr.hbm [resolvable:$true] %s19_s20 }
   0x3   :  { %s21_s22 = sshll.u32 %s997_s21, 4  ;;  %s34_s25 = sshll.u32 %s1079_s3, 4  ;;  %s22_s22 = int_to_ptr.vmem [resolvable:$true] %s21_s22  ;;  %s35_s25 = int_to_ptr.hbm [resolvable:$true] %s34_s25 }
   0x4   :  { %s998_s26 = smov 576   ;;  %s999_s27 = smov 36  }
   0x5   :  { %27 = dma.hbm_to_vmem [thread:$0]  %s20_s20, 2304, %s22_s22, [#allocation3], %s998_s26, %s998_s26, %s999_s27  }
   0x6   :  { %s1000_s28 = smov [#allocation5]   ;;  %s1001_s30 = smov 64  }
   0x7   :  { %s36_s29 = sshll.u32 %s1000_s28, 4  ;;  %s1002_s6 = smov 4   ;;  %s37_s29 = int_to_ptr.vmem [resolvable:$true] %s36_s29 }
   0x8   :  { %42 = dma.hbm_to_vmem [thread:$0]  %s35_s25, 3072, %s37_s29, [#allocation6], %s1001_s30, %s1001_s30, %s1002_s6  }
   0x9   :  { %991 = dma.done.wait [#allocation3], 2304  }
   0xa   :  { %992 = vsyncadd [#allocation3], 4294964992 }
   0xb   :  { %993 = dma.done.wait [#allocation6], 3072  }
   0xc   :  { %994 = vsyncadd [#allocation6], 4294964224  ;;  %v726_v0 = vld [vmem:[#allocation2 + $0x48] sm:$0xf]  ;;  %v879_v1 = vld [vmem:[#allocation2 + $0x68] sm:$0xf0] }
   0xd   :  { %v875_v2 = vld [vmem:[#allocation2 + $0x4c] sm:$0xf]  ;;  %v727_v3 = vor.u32 %v879_v1, %v726_v0  ;;  %v728_v4 = vld [vmem:[#allocation2 + $0x6c] sm:$0xf0]  ;;  %v880_v6 = vld [vmem:[#allocation2 + $0x70] sm:$0xf0] }
   0xe   :  { %v734_v5 = vld [vmem:[#allocation2 + $0x50] sm:$0xf]  ;;  %v731_v7 = vor.u32 %v875_v2, %v728_v4  ;;  %v876_v9 = vld [vmem:[#allocation2 + $0x54] sm:$0xf]  ;;  %v736_v10 = vld [vmem:[#allocation2 + $0x74] sm:$0xf0] }
   0xf   :  { %v735_v8 = vor.u32 %v880_v6, %v734_v5  ;;  %v690_v11 = vld [vmem:[#allocation2] sm:$0xf]  ;;  %183 = vmatpush.bf16.msra.mxu0 %v727_v3  ;;  %v739_v12 = vor.u32 %v876_v9, %v736_v10  ;;  %v870_v13 = vld [vmem:[#allocation2 + $0x20] sm:$0xf0]  ;;  %v692_v15 = vld [vmem:[#allocation2 + $0x24] sm:$0xf0] }
  0x10   :  { %v866_v14 = vld [vmem:[#allocation2 + $0x4] sm:$0xf]  ;;  %197 = vmatpush.bf16.msra.mxu1 %v731_v7  ;;  %v691_v16 = vor.u32 %v870_v13, %v690_v11  ;;  %v698_v18 = vld [vmem:[#allocation2 + $0x8] sm:$0xf]  ;;  %v871_v19 = vld [vmem:[#allocation2 + $0x28] sm:$0xf0] }
  0x11   :  { %211 = vmatpush.bf16.msra.mxu2 %v735_v8  ;;  %v695_v17 = vor.u32 %v866_v14, %v692_v15  ;;  %v867_v20 = vld [vmem:[#allocation2 + $0xc] sm:$0xf]  ;;  %225 = vmatpush.bf16.msra.mxu3 %v739_v12  ;;  %v699_v21 = vor.u32 %v871_v19, %v698_v18  ;;  %v700_v22 = vld [vmem:[#allocation2 + $0x2c] sm:$0xf0]  ;;  %v865_v23 = vld [vmem:[%s1076_s0] sm:$0xff]  ;;  %vm173_vm0 = vcmask 261120  }
  0x12   :  { %v742_v24 = vld [vmem:[#allocation2 + $0x58] sm:$0xf]  ;;  %v703_v25 = vor.u32 %v867_v20, %v700_v22  ;;  %v881_v26 = vld [vmem:[#allocation2 + $0x78] sm:$0xf0]  ;;  %v750_v27 = vld [vmem:[#allocation2 + $0x60] sm:$0xf] }
  0x13   :  { %v882_v28 = vld [vmem:[#allocation2 + $0x80] sm:$0xf0]  ;;  %184 = vmatpush.bf16.msra.mxu0 %v691_v16  ;;  %v743_v29 = vor.u32 %v881_v26, %v742_v24  ;;  %v706_v31 = vld [vmem:[#allocation2 + $0x10] sm:$0xf]  ;;  %v872_v32 = vld [vmem:[#allocation2 + $0x30] sm:$0xf0] }
  0x14   :  { %v751_v30 = vor.u32 %v882_v28, %v750_v27  ;;  %v878_v33 = vld [vmem:[#allocation2 + $0x64] sm:$0xf]  ;;  %198 = vmatpush.bf16.msra.mxu1 %v695_v17  ;;  %v752_v34 = vld [vmem:[#allocation2 + $0x84] sm:$0xf0]  ;;  %v714_v35 = vld [vmem:[#allocation2 + $0x18] sm:$0xf]  ;;  %v707_v37 = vor.u32 %v872_v32, %v706_v31 }
  0x15   :  { %212 = vmatpush.bf16.msra.mxu2 %v699_v21  ;;  %v873_v36 = vld [vmem:[#allocation2 + $0x38] sm:$0xf0]  ;;  %226 = vmatpush.bf16.msra.mxu3 %v703_v25  ;;  %v755_v38 = vor.u32 %v878_v33, %v752_v34  ;;  %v716_v40 = vld [vmem:[#allocation2 + $0x3c] sm:$0xf0]  ;;  %v758_v44 = vld [vmem:[#allocation2 + $0x68] sm:$0xf] }
  0x16   :  { %v869_v39 = vld [vmem:[#allocation2 + $0x1c] sm:$0xf]  ;;  %760 = vmatmul.msk.bf16.vlgmr.msra.gmra.mxu0 %vm173_vm0, %v865_v23  ;;  %v715_v42 = vor.u32 %v873_v36, %v714_v35  ;;  %v744_v43 = vld [vmem:[#allocation2 + $0x7c] sm:$0xf0]  ;;  %v883_v45 = vld [vmem:[#allocation2 + $0x88] sm:$0xf0] }
  0x17   :  { %239 = vmatpush.bf16.msrb.mxu0 %v743_v29  ;;  %v877_v41 = vld [vmem:[#allocation2 + $0x5c] sm:$0xf]  ;;  %761 = vmatmul.msk.bf16.vlgmr.msra.gmra.mxu1 %vm173_vm0, %v865_v23  ;;  %v759_v47 = vor.u32 %v883_v45, %v758_v44  ;;  %v868_v48 = vld [vmem:[#allocation2 + $0x14] sm:$0xf]  ;;  %v708_v49 = vld [vmem:[#allocation2 + $0x34] sm:$0xf0]  ;;  %v719_v52 = vor.u32 %v869_v39, %v716_v40 }
  0x18   :  { %762 = vmatmul.msk.bf16.vlgmr.msra.gmra.mxu2 %vm173_vm0, %v865_v23  ;;  %v747_v46 = vor.u32 %v877_v41, %v744_v43  ;;  %v722_v50 = vld [vmem:[#allocation2 + $0x20] sm:$0xf]  ;;  %763 = vmatmul.msk.bf16.vlgmr.msra.gmra.mxu3 %vm173_vm0, %v865_v23  ;;  %v874_v51 = vld [vmem:[#allocation2 + $0x40] sm:$0xf0]  ;;  %v711_v53 = vor.u32 %v868_v48, %v708_v49  ;;  %v891_v55 = vld [vmem:[#allocation5 + $0x38] sm:$0xff]  ;;  %vm311_vm1 = vcmask 1046528  }
  0x19   :  { %267 = vmatpush.bf16.msrb.mxu2 %v751_v30  ;;  %281 = vmatpush.bf16.msrb.mxu3 %v755_v38  ;;  %v723_v54 = vor.u32 %v874_v51, %v722_v50  ;;  %v890_v56 = vld [vmem:[#allocation5 + $0x30] sm:$0xff]  ;;  %v889_v57 = vld [vmem:[#allocation5 + $0x28] sm:$0xff]  ;;  %v888_v58 = vld [vmem:[#allocation5 + $0x20] sm:$0xff]  ;;  %vm331_vm2 = vcmask 1045504   ;;  %vm423_vm3 = vcmask 1040384   ;;  %vm355_vm4 = vcmask 1044480  }
  0x1a   :  { %253 = vmatpush.bf16.msrb.mxu1 %v747_v46  ;;  %v887_v59 = vld [vmem:[#allocation5 + $0x18] sm:$0xff]  ;;  %v886_v61 = vld [vmem:[#allocation5 + $0x10] sm:$0xff]  ;;  %v885_v63 = vld [vmem:[#allocation5 + $0x8] sm:$0xff]  ;;  %s1003_s13 = smov [#allocation7]   ;;  %s673_s17 = sshll.u32 %s1081_s5, 4  ;;  %s674_s17 = int_to_ptr.hbm [resolvable:$true] %s673_s17 }
  0x1b   :  { %240 = vmatpush.bf16.msrb.mxu0 %v707_v37  ;;  %v899_v60 = vld [vmem:[#allocation5 + $0x78] sm:$0xff]  ;;  %v898_v62 = vld [vmem:[#allocation5 + $0x70] sm:$0xff]  ;;  %v897_v0 = vld [vmem:[#allocation5 + $0x68] sm:$0xff]  ;;  %s671_s14 = sshll.u32 %s1003_s13, 4  ;;  %s672_s14 = int_to_ptr.vmem [resolvable:$true] %s671_s14 }
  0x1c   :  { %v884_v2 = vld [vmem:[#allocation5] sm:$0xff]  ;;  %v915_v6 = vld [vmem:[%s1078_s2] ss:$0 sm:$0xff]  ;;  %v895_v8 = vld [vmem:[#allocation5 + $0x58] sm:$0xff] }
  0x1d   :  { %268 = vmatpush.bf16.msrb.mxu2 %v715_v42  ;;  %282 = vmatpush.bf16.msrb.mxu3 %v719_v52  ;;  %v896_v3 = vld [vmem:[#allocation5 + $0x60] sm:$0xff]  ;;  %v907_v9 = vld [vmem:[#allocation5 + $0xb8] sm:$0xff]  ;;  %v894_v15 = vld [vmem:[#allocation5 + $0x50] sm:$0xff] }
  0x1e   :  { %254 = vmatpush.bf16.msrb.mxu1 %v711_v53  ;;  %v906_v16 = vld [vmem:[#allocation5 + $0xb0] sm:$0xff]  ;;  %v893_v22 = vld [vmem:[#allocation5 + $0x48] sm:$0xff]  ;;  %v892_v31 = vld [vmem:[#allocation5 + $0x40] sm:$0xff] }
  0x1f   :  { %295 = vmatpush.bf16.msra.mxu0 %v759_v47  ;;  %v904_v32 = vld [vmem:[#allocation5 + $0xa0] sm:$0xff]  ;;  %v916_v35 = vld [vmem:[%s1078_s2 + $0x1] ss:$0 sm:$0xff]  ;;  %v903_v40 = vld [vmem:[#allocation5 + $0x98] sm:$0xff] }
  0x20   :  { %v902_v50 = vld [vmem:[#allocation5 + $0x90] sm:$0xff] }
  0x21   :  { %639 = vmatpush.bf16.msra.mxu2 %v899_v60  ;;  %652 = vmatpush.bf16.msra.mxu3 %v907_v9 }
  0x22   :  { %626 = vmatpush.bf16.msra.mxu1 %v891_v55 }
  0x23   :  { %296 = vmatpush.bf16.msra.mxu0 %v723_v54 }
  0x25   :  { %640 = vmatpush.bf16.msra.mxu2 %v898_v62  ;;  %653 = vmatpush.bf16.msra.mxu3 %v906_v16 }
  0x26   :  { %764 = vmatmul.msk.bf16.vlgmr.msrb.gmra.mxu0 %vm173_vm0, %v865_v23  ;;  %627 = vmatpush.bf16.msra.mxu1 %v890_v56 }
  0x27   :  { %765 = vmatmul.msk.bf16.vlgmr.msrb.gmra.mxu1 %vm173_vm0, %v865_v23 }
  0x28   :  { %766 = vmatmul.msk.bf16.vlgmr.msrb.gmra.mxu2 %vm173_vm0, %v865_v23  ;;  %767 = vmatmul.msk.bf16.vlgmr.msrb.gmra.mxu3 %vm173_vm0, %v865_v23 }
  0x29   :  { %641 = vmatpush.bf16.msra.mxu2 %v897_v0 }
  0x2a   :  { %628 = vmatpush.bf16.msra.mxu1 %v889_v57 }
  0x2d   :  { %642 = vmatpush.bf16.msra.mxu2 %v896_v3  ;;  %v900_v3 = vld [vmem:[#allocation5 + $0x80] sm:$0xff] }
  0x2e   :  { %629 = vmatpush.bf16.msra.mxu1 %v888_v58 }
  0x31   :  { %643 = vmatpush.bf16.msra.mxu2 %v895_v8 }
  0x32   :  { %630 = vmatpush.bf16.msra.mxu1 %v887_v59 }
  0x35   :  { %644 = vmatpush.bf16.msra.mxu2 %v894_v15 }
  0x36   :  { %768 = vmatmul.msk.bf16.vlgmr.msra.gmra.mxu0 %vm173_vm0, %v865_v23  ;;  %631 = vmatpush.bf16.msra.mxu1 %v886_v61  ;;  %v905_v23 = vld [vmem:[#allocation5 + $0xa8] sm:$0xff] }
  0x37   :  { %654 = vmatpush.bf16.msra.mxu3 %v905_v23 }
  0x39   :  { %645 = vmatpush.bf16.msra.mxu2 %v893_v22 }
  0x3a   :  { %632 = vmatpush.bf16.msra.mxu1 %v885_v63  ;;  %v901_v63 = vld [vmem:[#allocation5 + $0x88] sm:$0xff] }
  0x3b   :  { %655 = vmatpush.bf16.msra.mxu3 %v904_v32 }
  0x3d   :  { %646 = vmatpush.bf16.msra.mxu2 %v892_v31 }
  0x3e   :  { %633 = vmatpush.bf16.msra.mxu1 %v884_v2 }
  0x3f   :  { %656 = vmatpush.bf16.msra.mxu3 %v903_v40 }
  0x43   :  { %657 = vmatpush.bf16.msra.mxu3 %v902_v50 }
  0x47   :  { %658 = vmatpush.bf16.msra.mxu3 %v901_v63  ;;  %v918_v63 = vld [vmem:[%s1080_s4] ss:$0 sm:$0xff] }
  0x4b   :  { %659 = vmatpush.bf16.msra.mxu3 %v900_v3 }
  0x93   :  { %v186_v1 = vpop.f32.mrf.mxu0 }
  0x94   :  { %v200_v4 = vpop.f32.mrf.mxu1 }
  0x95   :  { %v304_v5 = vrot.slane %v200_v4, 1 }
  0x97   :  { %v306_v7 = vadd.f32 %v304_v5, %v186_v1 }
  0x99   :  { %v309_v10 = vadd.f32 %v915_v6, %v306_v7 }
  0x9b   :  { %v214_v11 = vpop.f32.mrf.mxu2  ;;  %v310_v12 = vmax.f32 %v309_v10, 0.0  ;;  %v228_v13 = vpop.f32.mrf.mxu3 }
  0x9c   :  { %v188_v14 = vpop.f32.mrf.mxu0  ;;  %v202_v17 = vpop.f32.mrf.mxu1  ;;  %v320_v24 = vrot.slane %v228_v13, 1  ;;  %v917_v13 = vld [vmem:[%s1078_s2 + $0x2] ss:$0 sm:$0xff] }
  0x9d   :  { %v312_v18 = vsel %vm311_vm1, %v310_v12, -inf  ;;  %v364_v19 = vrot.slane %v202_v17, 1 }
  0x9e   :  { %v313_v20 = vrot.slane %v312_v18, 4  ;;  %v322_v33 = vadd.f32 %v320_v24, %v214_v11 }
  0x9f   :  { %v366_v21 = vadd.f32 %v364_v19, %v188_v14 }
  0xa0   :  { %v314_v25 = vmax.f32 %v312_v18, %v313_v20 }
  0xa1   :  { %v367_v26 = vadd.f32 %v915_v6, %v366_v21 }
  0xa2   :  { %v315_v36 = vrot.slane %v314_v25, 2 }
  0xa3   :  { %v216_v27 = vpop.f32.mrf.mxu2  ;;  %v368_v28 = vmax.f32 %v367_v26, 0.0  ;;  %v230_v29 = vpop.f32.mrf.mxu3 }
  0xa4   :  { %v242_v30 = vpop.f32.mrf.mxu0  ;;  %v377_v42 = vrot.slane %v230_v29, 1  ;;  %v316_v44 = vmax.f32 %v314_v25, %v315_v36  ;;  %v256_v57 = vpop.f32.mrf.mxu1 }
  0xa5   :  { %v324_v34 = vrot.slane %v242_v30, 2  ;;  %v369_v37 = vsel %vm311_vm1, %v368_v28, -inf }
  0xa6   :  { %v370_v38 = vrot.slane %v369_v37, 4  ;;  %v379_v52 = vadd.f32 %v377_v42, %v216_v27  ;;  %v317_v55 = vrot.slane %v316_v44, 1 }
  0xa7   :  { %v326_v39 = vadd.f32 %v324_v34, %v322_v33 }
  0xa8   :  { %v371_v41 = vmax.f32 %v369_v37, %v370_v38  ;;  %v318_v4 = vmax.f32 %v316_v44, %v317_v55 }
  0xa9   :  { %v329_v43 = vadd.f32 %v916_v35, %v326_v39 }
  0xaa   :  { %v372_v45 = vrot.slane %v371_v41, 2 }
  0xab   :  { %v330_v46 = vmax.f32 %v329_v43, 0.0  ;;  %v270_v47 = vpop.f32.mrf.mxu2  ;;  %v284_v58 = vpop.f32.mrf.mxu3 }
  0xac   :  { %v340_v48 = vrot.slane %v270_v47, 1  ;;  %v244_v49 = vpop.f32.mrf.mxu0  ;;  %v373_v51 = vmax.f32 %v371_v41, %v372_v45  ;;  %v344_v61 = vrot.slane %v284_v58, 2  ;;  %v258_v20 = vpop.f32.mrf.mxu1 }
  0xad   :  { %v332_v53 = vsel %vm331_vm2, %v330_v46, -inf  ;;  %v381_v54 = vrot.slane %v244_v49, 2 }
  0xae   :  { %v333_v56 = vrot.slane %v332_v53, 4  ;;  %v374_v59 = vrot.slane %v373_v51, 1  ;;  %v342_v60 = vadd.f32 %v340_v48, %v256_v57 }
  0xaf   :  { %v383_v62 = vadd.f32 %v381_v54, %v379_v52 }
  0xb0   :  { %v375_v0 = vmax.f32 %v373_v51, %v374_v59  ;;  %v334_v2 = vmax.f32 %v332_v53, %v333_v56  ;;  %v346_v5 = vadd.f32 %v344_v61, %v342_v60 }
  0xb1   :  { %v384_v1 = vadd.f32 %v916_v35, %v383_v62 }
  0xb2   :  { %v417_v8 = vrot.slane %v375_v0, 7  ;;  %v335_v15 = vrot.slane %v334_v2, 2 }
  0xb3   :  { %v385_v6 = vmax.f32 %v384_v1, 0.0  ;;  %v272_v7 = vpop.f32.mrf.mxu2  ;;  %v286_v21 = vpop.f32.mrf.mxu3 }
  0xb4   :  { %v298_v9 = vpop.f32.mrf.mxu0  ;;  %v394_v11 = vrot.slane %v272_v7, 1  ;;  %v424_v14 = vsel %vm423_vm3, %v318_v4, %v417_v8  ;;  %v336_v24 = vmax.f32 %v334_v2, %v335_v15  ;;  %v398_v26 = vrot.slane %v286_v21, 2 }
  0xb5   :  { %v386_v10 = vsel %vm331_vm2, %v385_v6, -inf  ;;  %v348_v12 = vrot.slane %v298_v9, 3  ;;  %v427_v17 = vpack.c.bf16 %v424_v14, %v424_v14 }
  0xb6   :  { %v387_v16 = vrot.slane %v386_v10, 4  ;;  %v396_v22 = vadd.f32 %v394_v11, %v258_v20  ;;  %v337_v33 = vrot.slane %v336_v24, 1 }
  0xb7   :  { %v350_v18 = vadd.f32 %v348_v12, %v346_v5  ;;  %634 = vmatmul.bf16.vlgmr.msra.gmra.mxu1 %v427_v17 }
  0xb8   :  { %v388_v19 = vmax.f32 %v386_v10, %v387_v16  ;;  %v400_v30 = vadd.f32 %v398_v26, %v396_v22  ;;  %v338_v39 = vmax.f32 %v336_v24, %v337_v33 }
  0xb9   :  { %v353_v23 = vadd.f32 %v917_v13, %v350_v18 }
  0xba   :  { %v389_v25 = vrot.slane %v388_v19, 2 }
  0xbb   :  { %v354_v27 = vmax.f32 %v353_v23, 0.0 }
  0xbc   :  { %v390_v28 = vmax.f32 %v388_v19, %v389_v25  ;;  %v300_v29 = vpop.f32.mrf.mxu0 }
  0xbd   :  { %v356_v31 = vsel %vm355_vm4, %v354_v27, -inf  ;;  %v402_v32 = vrot.slane %v300_v29, 3 }
  0xbe   :  { %v391_v34 = vrot.slane %v390_v28, 1  ;;  %v357_v35 = vrot.slane %v356_v31, 4 }
  0xbf   :  { %v404_v36 = vadd.f32 %v402_v32, %v400_v30 }
  0xc0   :  { %v392_v37 = vmax.f32 %v390_v28, %v391_v34  ;;  %v358_v40 = vmax.f32 %v356_v31, %v357_v35 }
  0xc1   :  { %v405_v38 = vadd.f32 %v917_v13, %v404_v36 }
  0xc2   :  { %v418_v41 = vrot.slane %v392_v37, 7  ;;  %v359_v46 = vrot.slane %v358_v40, 2 }
  0xc3   :  { %v406_v42 = vmax.f32 %v405_v38, 0.0 }
  0xc4   :  { %v425_v43 = vsel %vm423_vm3, %v338_v39, %v418_v41  ;;  %v360_v49 = vmax.f32 %v358_v40, %v359_v46 }
  0xc5   :  { %v407_v44 = vsel %vm355_vm4, %v406_v42, -inf  ;;  %v428_v45 = vpack.c.bf16 %v425_v43, %v425_v43 }
  0xc6   :  { %v408_v47 = vrot.slane %v407_v44, 4  ;;  %v361_v52 = vrot.slane %v360_v49, 1 }
  0xc7   :  { %647 = vmatmul.bf16.vlgmr.msra.gmra.mxu2 %v428_v45 }
  0xc8   :  { %v409_v48 = vmax.f32 %v407_v44, %v408_v47  ;;  %v362_v55 = vmax.f32 %v360_v49, %v361_v52 }
  0xca   :  { %v410_v50 = vrot.slane %v409_v48, 2 }
  0xcc   :  { %v411_v51 = vmax.f32 %v409_v48, %v410_v50 }
  0xce   :  { %v412_v53 = vrot.slane %v411_v51, 1 }
  0xd0   :  { %v413_v54 = vmax.f32 %v411_v51, %v412_v53 }
  0xd2   :  { %v419_v56 = vrot.slane %v413_v54, 7 }
  0xd4   :  { %v426_v57 = vsel %vm423_vm3, %v362_v55, %v419_v56 }
  0xd5   :  { %v429_v58 = vpack.c.bf16 %v426_v57, %v426_v57 }
  0xd7   :  { %660 = vmatmul.bf16.vlgmr.msra.gmra.mxu3 %v429_v58 }
 0x134   :  { %v635_v59 = vpop.f32.mrf.mxu1 }
 0x135   :  { %v636_v0 = vadd.f32 %v918_v63, %v635_v59 }
 0x13c   :  { %v637_v60 = vpop.f32.mrf.mxu1 }
 0x14a   :  { %v648_v61 = vpop.f32.mrf.mxu2 }
 0x14b   :  { %v649_v1 = vadd.f32 %v648_v61, %v636_v0 }
 0x152   :  { %v650_v62 = vpop.f32.mrf.mxu2 }
 0x15a   :  { %v661_v2 = vpop.f32.mrf.mxu3 }
 0x15b   :  { %v662_v3 = vadd.f32 %v661_v2, %v649_v1 }
 0x15d   :  { %665 = vst [vmem:[#allocation7] sm:$0x3] %v662_v3 }
 0x15e   :  { %676 = dma.vmem_to_hbm [thread:$0]  %s672_s14, 32, %s674_s17, [#allocation4]  }
 0x162   :  { %v663_v4 = vpop.f32.mrf.mxu3 }
 0x163   :  { %995 = dma.done.wait [#allocation4], 32  }
 0x164   :  { %996 = vsyncadd [#allocation4], 4294967264 }
 0x165   :  { %681 = vsyncpa [#allocation3], 1 }
 0x166   :  { %682 = vsyncpa [#allocation6], 1 }
 0x167   :  { %683 = vsyncpa [#allocation4], 1 }

</bundles_post_ra>
